<compile_context>
chip_gen: v6e
topology: v6e:2x2x1
jax: 0.10.0
libtpu: 0.0.40
codegen_flags: <defaults>
</compile_context>

<pallas_src>
import functools
import math

import jax
import jax.numpy as jnp
from jax import lax
from jax.experimental import pallas as pl
from jax.experimental.pallas import tpu as pltpu

_INV_SQRT2 = 1.0 / math.sqrt(2.0)


def _round_up(n, m):
    return (n + m - 1) // m * m


def _gelu(h, approximate):
    if approximate:
        # tanh approximation routes through the otherwise-idle EUP slot.
        return jax.nn.gelu(h, approximate=True)
    # Exact erf-based GELU: matches torch.nn.GELU() default numerics.
    return 0.5 * h * (1.0 + lax.erf(h * _INV_SQRT2))


# --------------------------------------------------------------------------- #
# Kernels
# --------------------------------------------------------------------------- #
def _ffn_resident_kernel(x_ref, w1_ref, b1_ref, w2_ref, b2_ref, o_ref, *,
                         approximate_gelu, precision):
    # Grid: (row_tiles,). Weights are fully resident (constant index_map).
    h = jnp.dot(x_ref[...], w1_ref[...],
                preferred_element_type=jnp.float32, precision=precision)
    h = _gelu(h + b1_ref[...], approximate_gelu)
    y = jnp.dot(h.astype(w2_ref.dtype), w2_ref[...],
                preferred_element_type=jnp.float32, precision=precision)
    o_ref[...] = (y + b2_ref[...]).astype(o_ref.dtype)


def _ffn_chunked_f32out_kernel(x_ref, w1_ref, b1_ref, w2_ref, b2_ref, o_ref, *,
                               approximate_gelu, precision):
    # Grid: (row_tiles [parallel], hidden_chunks [arbitrary]); f32 output block
    # stays resident across the k axis, so accumulate directly into it.
    k = pl.program_id(1)

    @pl.when(k == 0)
    def _():
        # Fold the output bias into the init instead of a finalize pass.
        o_ref[...] = jnp.broadcast_to(b2_ref[...], o_ref.shape)

    h = jnp.dot(x_ref[...], w1_ref[...],
                preferred_element_type=jnp.float32, precision=precision)
    h = _gelu(h + b1_ref[...], approximate_gelu)
    o_ref[...] += jnp.dot(h.astype(w2_ref.dtype), w2_ref[...],
                          preferred_element_type=jnp.float32,
                          precision=precision)


def _ffn_chunked_scratch_kernel(x_ref, w1_ref, b1_ref, w2_ref, b2_ref, o_ref,
                                acc_ref, *, approximate_gelu, precision):
    # Same as above but with an f32 scratch accumulator for non-f32 outputs.
    k = pl.program_id(1)

    @pl.when(k == 0)
    def _():
        acc_ref[...] = jnp.broadcast_to(b2_ref[...], acc_ref.shape)

    h = jnp.dot(x_ref[...], w1_ref[...],
                preferred_element_type=jnp.float32, precision=precision)
    h = _gelu(h + b1_ref[...], approximate_gelu)
    acc_ref[...] += jnp.dot(h.astype(w2_ref.dtype), w2_ref[...],
                            preferred_element_type=jnp.float32,
                            precision=precision)

    @pl.when(k == pl.num_programs(1) - 1)
    def _():
        o_ref[...] = acc_ref[...].astype(o_ref.dtype)


# --------------------------------------------------------------------------- #
# Parameter preparation (hoisted out of the per-call path)
# --------------------------------------------------------------------------- #
def prepare_ffn_params(w1, b1, w2, b2, *, matmul_dtype=None):
    """Pad/cast FFN weights once; reuse across calls.

    w1: (D_in, H), b1: (H,), w2: (H, D_out), b2: (D_out,)  -- stored [in, out]
    (transposed vs. PyTorch's [out, in]).  Feature dims are zero-padded to
    multiples of 128 (lane-dense); padding is mathematically inert (zero
    weights/bias -> gelu(0)=0 -> zero contribution) and is sliced off on
    output.  When dims are already 128-aligned (common transformer case) this
    is just a cast.
    """
    if matmul_dtype is None:
        matmul_dtype = w1.dtype
    d_in, h_dim = w1.shape
    d_out = w2.shape[1]
    d_in_p = _round_up(d_in, 128)
    h_p = _round_up(h_dim, 128)
    d_out_p = _round_up(d_out, 128)

    def pad2(a, rows, cols, dtype):
        a = a.astype(dtype)
        if a.shape == (rows, cols):
            return a
        return jnp.zeros((rows, cols), dtype).at[:a.shape[0], :a.shape[1]].set(a)

    return dict(
        w1=pad2(w1, d_in_p, h_p, matmul_dtype),
        b1=pad2(b1.reshape(1, -1), 1, h_p, jnp.float32),
        w2=pad2(w2, h_p, d_out_p, matmul_dtype),
        b2=pad2(b2.reshape(1, -1), 1, d_out_p, jnp.float32),
        d_in=d_in, h=h_dim, d_out=d_out,
        d_in_p=d_in_p, h_p=h_p, d_out_p=d_out_p,
        matmul_dtype=jnp.dtype(matmul_dtype),
    )


def _vmem_budget_bytes():
    # Generation-aware budget: 75% of physical VMEM (v5e/v6e: 128 MiB,
    # v7x: 64 MiB per TC). Conservative fallback if the query is unavailable.
    cap = 64 * 1024 * 1024
    try:
        info = pltpu.get_tpu_info()
        cap = int(getattr(info, "vmem_capacity_bytes", cap)) or cap
    except Exception:
        pass
    return (cap * 3) // 4


# --------------------------------------------------------------------------- #
# Wrapper
# --------------------------------------------------------------------------- #
def feed_forward_network_prepared(x, params, *, tm=None, block_h=None,
                                  approximate_gelu=False, precision=None,
                                  weights_resident=None,
                                  vmem_limit_bytes=None):
    """Run the FFN on x: (M, D_in) using prepared (padded) params."""
    out_dtype = x.dtype
    M, d_in = x.shape
    assert d_in == params["d_in"], "input feature dim mismatch"

    mdt = params["matmul_dtype"]
    d_in_p, h_p, d_out_p = params["d_in_p"], params["h_p"], params["d_out_p"]
    d_out = params["d_out"]
    msize = jnp.dtype(mdt).itemsize
    osize = jnp.dtype(out_dtype).itemsize

    vmem_budget = (vmem_limit_bytes if vmem_limit_bytes is not None
                   else _vmem_budget_bytes())

    # --- row tile -----------------------------------------------------------
    # bf16/int8 matmul inputs pack (16,128) vregs; f32 packs (8,128).
    row_granule = 8 if msize >= 4 else 16
    m_pad_min = _round_up(M, row_granule)
    tm_req = 256 if tm is None else tm
    tm_eff = min(_round_up(tm_req, row_granule), m_pad_min)
    if tm is None:
        # Shrink until phantom-row padding waste is <= ~12.5% of M.
        while tm_eff > row_granule and (_round_up(M, tm_eff) - M) * 8 > M:
            tm_eff = max(row_granule, _round_up(tm_eff // 2, row_granule))
    m_pad = _round_up(M, tm_eff)

    # --- resident vs. streaming weights --------------------------------------
    bias_bytes = (h_p + d_out_p) * 4
    resident_total = (2 * (d_in_p * h_p + h_p * d_out_p) * msize   # 2x buffered
                      + 2 * tm_eff * d_in_p * msize
                      + 2 * tm_eff * d_out_p * osize
                      + 2 * bias_bytes)
    if weights_resident is None:
        weights_resident = resident_total <= vmem_budget

    kernel_kwargs = dict(approximate_gelu=approximate_gelu, precision=precision)

    if weights_resident:
        # v7x has two TensorCores: give the parallel row axis >= 2 tiles when
        # it costs no extra padded rows (weights are resident, so no extra
        # HBM re-streaming).
        if m_pad // tm_eff == 1 and tm_eff >= 2 * row_granule:
            half = _round_up(tm_eff // 2, row_granule)
            if _round_up(M, half) == m_pad:
                tm_eff = half

        grid = (m_pad // tm_eff,)
        kernel = functools.partial(_ffn_resident_kernel, **kernel_kwargs)
        in_specs = [
            pl.BlockSpec((tm_eff, d_in_p), lambda i: (i, 0)),   # x rows
            pl.BlockSpec((d_in_p, h_p), lambda i: (0, 0)),      # W1 (resident)
            pl.BlockSpec((1, h_p), lambda i: (0, 0)),           # b1
            pl.BlockSpec((h_p, d_out_p), lambda i: (0, 0)),     # W2 (resident)
            pl.BlockSpec((1, d_out_p), lambda i: (0, 0)),       # b2
        ]
        out_specs = pl.BlockSpec((tm_eff, d_out_p), lambda i: (i, 0))
        scratch_shapes = []
        dim_sem = ("parallel",)
    else:
        # Streaming path: hidden dim chunked over an "arbitrary" grid axis.
        block_h_req = 512 if block_h is None else block_h
        use_scratch = jnp.dtype(out_dtype) != jnp.dtype(jnp.float32)

        def _pick_th(tm_cur):
            cands = [c for c in (2048, 1024, 512, 256, 128)
                     if c <= max(block_h_req, 128) and h_p % c == 0] or [128]
            sbytes = tm_cur * d_out_p * 4 if use_scratch else 0
            for c in cands:
                ws = (2 * (tm_cur * d_in_p + d_in_p * c + c * d_out_p) * msize
                      + 2 * tm_cur * d_out_p * osize
                      + 2 * (c + d_out_p) * 4 + sbytes)
                if ws <= vmem_budget:
                    return c, True
            return cands[-1], False

        th, fits = _pick_th(tm_eff)
        while not fits and tm_eff > row_granule:
            tm_eff = max(row_granule, _round_up(tm_eff // 2, row_granule))
            th, fits = _pick_th(tm_eff)
        m_pad = _round_up(M, tm_eff)
        # TODO(synk): for very large d_in (>= 8192 f32) also chunk the first
        # matmul's reduction instead of holding the full (tm, d_in_p) x block.

        grid = (m_pad // tm_eff, h_p // th)
        if use_scratch:
            kernel = functools.partial(_ffn_chunked_scratch_kernel,
                                       **kernel_kwargs)
            scratch_shapes = [pltpu.VMEM((tm_eff, d_out_p), jnp.float32)]
        else:
            kernel = functools.partial(_ffn_chunked_f32out_kernel,
                                       **kernel_kwargs)
            scratch_shapes = []
        in_specs = [
            pl.BlockSpec((tm_eff, d_in_p), lambda i, k: (i, 0)),  # x rows
            pl.BlockSpec((d_in_p, th), lambda i, k: (0, k)),      # W1 chunk
            pl.BlockSpec((1, th), lambda i, k: (0, k)),           # b1 chunk
            pl.BlockSpec((th, d_out_p), lambda i, k: (k, 0)),     # W2 chunk
            pl.BlockSpec((1, d_out_p), lambda i, k: (0, 0)),      # b2
        ]
        out_specs = pl.BlockSpec((tm_eff, d_out_p), lambda i, k: (i, 0))
        dim_sem = ("parallel", "arbitrary")

    # --- activation padding (per-call, unavoidable; skipped when aligned) ----
    if (M, d_in) == (m_pad, d_in_p) and x.dtype == mdt:
        xp = x
    else:
        xp = jnp.zeros((m_pad, d_in_p), mdt).at[:M, :d_in].set(x.astype(mdt))

    out_p = pl.pallas_call(
        kernel,
        out_shape=jax.ShapeDtypeStruct((m_pad, d_out_p), out_dtype),
        grid_spec=pltpu.PrefetchScalarGridSpec(
            num_scalar_prefetch=0,
            grid=grid,
            in_specs=in_specs,
            out_specs=out_specs,
            scratch_shapes=scratch_shapes,
        ),
        compiler_params=pltpu.CompilerParams(
            dimension_semantics=dim_sem,
            vmem_limit_bytes=int(vmem_budget),
        ),
    )(xp, params["w1"], params["b1"], params["w2"], params["b2"])

    if (m_pad, d_out_p) != (M, d_out):
        out_p = out_p[:M, :d_out]
    return out_p


def feed_forward_network(x, w1, b1, w2, b2, *, matmul_dtype=None, **opts):
    """Convenience wrapper (pads weights on every call; prefer
    prepare_ffn_params + feed_forward_network_prepared in hot loops)."""
    params = prepare_ffn_params(w1, b1, w2, b2, matmul_dtype=matmul_dtype)
    return feed_forward_network_prepared(x, params, **opts)


# --------------------------------------------------------------------------- #
# Reference + demo
# --------------------------------------------------------------------------- #
def _xavier_uniform(key, fan_in, fan_out, shape):
    bound = math.sqrt(6.0 / (fan_in + fan_out))
    return jax.random.uniform(key, shape, jnp.float32, -bound, bound)


def _ref_ffn(x, w1, b1, w2, b2):
    h = x @ w1 + b1
    h = 0.5 * h * (1.0 + lax.erf(h * _INV_SQRT2))
    return h @ w2 + b2


def _make_problem(key, M, d_in, hidden, d_out):
    kx, kw1, kb1, kw2, kb2 = jax.random.split(key, 5)
    x = jax.random.normal(kx, (M, d_in), jnp.float32)
    w1 = _xavier_uniform(kw1, d_in, hidden, (d_in, hidden))
    b1 = jax.random.uniform(kb1, (hidden,), jnp.float32,
                            -1.0 / math.sqrt(d_in), 1.0 / math.sqrt(d_in))
    w2 = _xavier_uniform(kw2, hidden, d_out, (hidden, d_out))
    b2 = jax.random.uniform(kb2, (d_out,), jnp.float32,
                            -1.0 / math.sqrt(hidden), 1.0 / math.sqrt(hidden))
    return x, w1, b1, w2, b2


if __name__ == "__main__":
    key = jax.random.PRNGKey(0)
    k_a, k_b = jax.random.split(key)

    # Small shapes implied by the module: 8 rows, input_dim=32, hidden=64, out=32
    x, w1, b1, w2, b2 = _make_problem(k_a, 8, 32, 64, 32)
    ref = _ref_ffn(x, w1, b1, w2, b2)

    # 1) f32 parity path, weights padded once (resident-weights kernel).
    params = prepare_ffn_params(w1, b1, w2, b2)
    out = jax.block_until_ready(feed_forward_network_prepared(x, params))
    assert out.shape == (8, 32)
    assert jnp.allclose(out, ref, atol=1e-5, rtol=1e-5)

    # 2) bf16 MXU fast path (f32 accumulation / bias / GELU), resident weights.
    params_bf16 = prepare_ffn_params(w1, b1, w2, b2, matmul_dtype=jnp.bfloat16)
    out_bf16 = jax.block_until_ready(
        feed_forward_network_prepared(x, params_bf16))
    assert jnp.allclose(out_bf16, ref, atol=3e-2, rtol=3e-2)

    # 3) Streaming (hidden-chunked) path, odd shapes, forced non-resident:
    #    f32 output -> accumulate directly into o_ref (no scratch).
    x2, w1b, b1b, w2b, b2b = _make_problem(k_b, 24, 48, 320, 40)
    ref2 = _ref_ffn(x2, w1b, b1b, w2b, b2b)
    params2 = prepare_ffn_params(w1b, b1b, w2b, b2b)
    out2 = jax.block_until_ready(feed_forward_network_prepared(
        x2, params2, weights_resident=False, block_h=128))
    assert out2.shape == (24, 40)
    assert jnp.allclose(out2, ref2, atol=1e-5, rtol=1e-5)

    # 4) Streaming path with bf16 activations/output -> scratch-accumulator kernel.
    params2_bf16 = prepare_ffn_params(w1b, b1b, w2b, b2b,
                                      matmul_dtype=jnp.bfloat16)
    out2_bf16 = jax.block_until_ready(feed_forward_network_prepared(
        x2.astype(jnp.bfloat16), params2_bf16,
        weights_resident=False, block_h=128))
    assert jnp.allclose(out2_bf16.astype(jnp.float32), ref2,
                        atol=3e-2, rtol=3e-2)

    # 5) Convenience wrapper (pads internally on each call).
    out_conv = jax.block_until_ready(feed_forward_network(x, w1, b1, w2, b2))
    assert jnp.allclose(out_conv, ref, atol=1e-5, rtol=1e-5)

    print("KERNEL_OK")
</pallas_src>

<mosaic_0001>
module attributes {stable_mosaic.version = 11 : i64} {
  func.func @_ffn_resident_kernel(%arg0: i32, %arg1: memref<8x128xf32, #tpu.memory_space<vmem>>, %arg2: memref<128x128xf32, #tpu.memory_space<vmem>>, %arg3: memref<1x128xf32, #tpu.memory_space<vmem>>, %arg4: memref<128x128xf32, #tpu.memory_space<vmem>>, %arg5: memref<1x128xf32, #tpu.memory_space<vmem>>, %arg6: memref<8x128xf32, #tpu.memory_space<vmem>>) attributes {dimension_semantics = [#tpu.dimension_semantics<parallel>], iteration_bounds = array<i64: 1>, scalar_prefetch = 0 : i64, scratch_operands = 0 : i64, tpu.core_type = #tpu.core_type<tc>, window_params = [{transform_indices = @transform_0, window_bounds = array<i64: 8, 128>}, {pipeline_mode = #tpu.pipeline_mode<synchronous>, transform_indices = @transform_1, window_bounds = array<i64: 128, 128>}, {pipeline_mode = #tpu.pipeline_mode<synchronous>, transform_indices = @transform_2, window_bounds = array<i64: 1, 128>}, {pipeline_mode = #tpu.pipeline_mode<synchronous>, transform_indices = @transform_3, window_bounds = array<i64: 128, 128>}, {pipeline_mode = #tpu.pipeline_mode<synchronous>, transform_indices = @transform_4, window_bounds = array<i64: 1, 128>}, {transform_indices = @transform_5, window_bounds = array<i64: 8, 128>}]} {
    %c0 = arith.constant 0 : index
    %c0_0 = arith.constant 0 : index
    %0 = vector.load %arg1[%c0, %c0_0] : memref<8x128xf32, #tpu.memory_space<vmem>>, vector<8x128xf32>
    %c0_1 = arith.constant 0 : index
    %c0_2 = arith.constant 0 : index
    %1 = vector.load %arg2[%c0_1, %c0_2] : memref<128x128xf32, #tpu.memory_space<vmem>>, vector<128x128xf32>
    %cst = arith.constant dense<0.000000e+00> : vector<8x128xf32>
    %2 = tpu.matmul %0, %1, %cst {dimension_numbers = #tpu.dot_dimension_numbers<[1], [0], [0], [1], [0, 0, 1, 1], [], []>} : vector<8x128xf32>, vector<128x128xf32>, vector<8x128xf32> -> vector<8x128xf32>
    %c0_3 = arith.constant 0 : index
    %c0_4 = arith.constant 0 : index
    %3 = vector.load %arg3[%c0_3, %c0_4] : memref<1x128xf32, #tpu.memory_space<vmem>>, vector<1x128xf32>
    %4 = vector.broadcast %3 : vector<1x128xf32> to vector<8x128xf32>
    %5 = arith.addf %2, %4 : vector<8x128xf32>
    %cst_5 = arith.constant 5.000000e-01 : f32
    %6 = vector.broadcast %cst_5 : f32 to vector<8x128xf32>
    %7 = arith.mulf %6, %5 : vector<8x128xf32>
    %cst_6 = arith.constant 0.707106769 : f32
    %8 = vector.broadcast %cst_6 : f32 to vector<8x128xf32>
    %9 = arith.mulf %5, %8 : vector<8x128xf32>
    %10 = math.erf %9 : vector<8x128xf32>
    %cst_7 = arith.constant 1.000000e+00 : f32
    %11 = vector.broadcast %cst_7 : f32 to vector<8x128xf32>
    %12 = arith.addf %11, %10 : vector<8x128xf32>
    %13 = arith.mulf %7, %12 : vector<8x128xf32>
    %c0_8 = arith.constant 0 : index
    %c0_9 = arith.constant 0 : index
    %14 = vector.load %arg4[%c0_8, %c0_9] : memref<128x128xf32, #tpu.memory_space<vmem>>, vector<128x128xf32>
    %cst_10 = arith.constant dense<0.000000e+00> : vector<8x128xf32>
    %15 = tpu.matmul %13, %14, %cst_10 {dimension_numbers = #tpu.dot_dimension_numbers<[1], [0], [0], [1], [0, 0, 1, 1], [], []>} : vector<8x128xf32>, vector<128x128xf32>, vector<8x128xf32> -> vector<8x128xf32>
    %c0_11 = arith.constant 0 : index
    %c0_12 = arith.constant 0 : index
    %16 = vector.load %arg5[%c0_11, %c0_12] : memref<1x128xf32, #tpu.memory_space<vmem>>, vector<1x128xf32>
    %17 = vector.broadcast %16 : vector<1x128xf32> to vector<8x128xf32>
    %18 = arith.addf %15, %17 : vector<8x128xf32>
    %c0_13 = arith.constant 0 : index
    %c0_14 = arith.constant 0 : index
    %19 = vector.load %arg6[%c0_13, %c0_14] : memref<8x128xf32, #tpu.memory_space<vmem>>, vector<8x128xf32>
    tpu.vector_store %arg6[%c0_13, %c0_14], %18 {strides = array<i32>} : memref<8x128xf32, #tpu.memory_space<vmem>>, vector<8x128xf32>,
    return
  }
  func.func @transform_0(%arg0: i32) -> (i32, i32) {
    %c0_i32 = arith.constant 0 : i32
    %c0_i32_0 = arith.constant 0 : i32
    return %arg0, %c0_i32 : i32, i32
  }
  func.func @transform_1(%arg0: i32) -> (i32, i32) {
    %c0_i32 = arith.constant 0 : i32
    %c0_i32_0 = arith.constant 0 : i32
    %c0_i32_1 = arith.constant 0 : i32
    return %c0_i32, %c0_i32_0 : i32, i32
  }
  func.func @transform_2(%arg0: i32) -> (i32, i32) {
    %c0_i32 = arith.constant 0 : i32
    %c0_i32_0 = arith.constant 0 : i32
    %c0_i32_1 = arith.constant 0 : i32
    return %c0_i32, %c0_i32_0 : i32, i32
  }
  func.func @transform_3(%arg0: i32) -> (i32, i32) {
    %c0_i32 = arith.constant 0 : i32
    %c0_i32_0 = arith.constant 0 : i32
    %c0_i32_1 = arith.constant 0 : i32
    return %c0_i32, %c0_i32_0 : i32, i32
  }
  func.func @transform_4(%arg0: i32) -> (i32, i32) {
    %c0_i32 = arith.constant 0 : i32
    %c0_i32_0 = arith.constant 0 : i32
    %c0_i32_1 = arith.constant 0 : i32
    return %c0_i32, %c0_i32_0 : i32, i32
  }
  func.func @transform_5(%arg0: i32) -> (i32, i32) {
    %c0_i32 = arith.constant 0 : i32
    %c0_i32_0 = arith.constant 0 : i32
    return %arg0, %c0_i32 : i32, i32
  }
}

</mosaic_0001>

<bundles_post_ra>
// kernel: tpu_custom_call.1
= control target key start
LH: loop header
LB: loop body
LE: loop exit
PB: predicated region body
PF: predicated region fallthrough
CT: control target
= control target key end

     0   :  { %10 = vsyncpa [#allocation3], 0  ;;  %s561_s0 = inlined_call_operand.hbm [shape: f32[8,128], index: 0, kind: input, shape index: {}]   ;;  %s562_s1 = inlined_call_operand.hbm [shape: f32[128,128], index: 1, kind: input, shape index: {}]   ;;  %s563_s2 = inlined_call_operand.vmem [shape: f32[1,128], index: 2, kind: input, shape index: {}]   ;;  %s564_s3 = inlined_call_operand.hbm [shape: f32[128,128], index: 3, kind: input, shape index: {}]   ;;  %s565_s4 = inlined_call_operand.vmem [shape: f32[1,128], index: 4, kind: input, shape index: {}]   ;;  %s566_s5 = inlined_call_operand.hbm [shape: f32[8,128], index: 5, kind: output, shape index: {}]  }
   0x1   :  { %11 = vsyncpa [#allocation6], 0 }
   0x2   :  { %12 = vsyncpa [#allocation4], 0  ;;  %s471_s18 = smov [#allocation5]  }
   0x3   :  { %s28_s19 = sshll.u32 %s471_s18, 4  ;;  %s29_s19 = int_to_ptr.vmem [resolvable:$true] %s28_s19 }
   0x4   :  { %s393_s20 = scalar_lea.vmem %s29_s19, 2048  ;;  %p398_p1 = scmp.lt.s32.totalorder %s29_s19, %s29_s19 }
   0x5   :  { %p394_p0 = scmp.ne.s32.totalorder %s29_s19, %s393_s20  ;;  %p399_p2 = scmp.lt.s32.totalorder %s393_s20, %s393_s20 }
   0x7   :  { %p400_p3 = por %p399_p2, %p398_p1 }
   0x9   :  { %p401_p4 = pnand %p400_p3, %p394_p0 }
   0xb   :  { %404 = shalt.err (!%p401_p4)
}
   0xc   :  { %s472_s21 = smov 128   ;;  %s473_s22 = smov 8  }
   0xd   :  { %34 = dma.hbm_to_vmem [thread:$0]  %s562_s1, 2048, %s29_s19, [#allocation6], %s472_s21, %s472_s21, %s473_s22  }
   0xe   :  { %s474_s25 = smov [#allocation2]   ;;  %s475_s27 = smov [#allocation7]  }
   0xf   :  { %s19_s26 = sshll.u32 %s474_s25, 4  ;;  %s42_s28 = sshll.u32 %s475_s27, 4  ;;  %s20_s26 = int_to_ptr.vmem [resolvable:$true] %s19_s26  ;;  %s43_s28 = int_to_ptr.vmem [resolvable:$true] %s42_s28 }
  0x10   :  { %s413_s29 = scalar_lea.vmem %s20_s26, 128  ;;  %p418_p6 = scmp.lt.s32.totalorder %s20_s26, %s20_s26 }
  0x11   :  { %p414_p5 = scmp.ne.s32.totalorder %s20_s26, %s413_s29  ;;  %p419_p7 = scmp.lt.s32.totalorder %s413_s29, %s413_s29 }
  0x13   :  { %p420_p8 = por %p419_p7, %p418_p6 }
  0x15   :  { %p421_p9 = pnand %p420_p8, %p414_p5 }
  0x17   :  { %424 = shalt.err (!%p421_p9)
}
  0x18   :  { %22 = dma.hbm_to_vmem [thread:$0]  %s561_s0, 128, %s20_s26, [#allocation3]  }
  0x19   :  { %s433_s7 = scalar_lea.vmem %s43_s28, 2048  ;;  %p438_p11 = scmp.lt.s32.totalorder %s43_s28, %s43_s28 }
  0x1a   :  { %p434_p10 = scmp.ne.s32.totalorder %s43_s28, %s433_s7  ;;  %p439_p12 = scmp.lt.s32.totalorder %s433_s7, %s433_s7 }
  0x1c   :  { %p440_p13 = por %p439_p12, %p438_p11 }
  0x1e   :  { %p441_p0 = pnand %p440_p13, %p434_p10 }
  0x20   :  { %444 = shalt.err (!%p441_p0)
}
  0x21   :  { %48 = dma.hbm_to_vmem [thread:$0]  %s564_s3, 2048, %s43_s28, [#allocation6], %s472_s21, %s472_s21, %s473_s22  }
  0x22   :  { %465 = dma.done.wait [#allocation3], 128  }
  0x23   :  { %466 = vsyncadd [#allocation3], 4294967168 }
  0x24   :  { %467 = dma.done.wait [#allocation6], 4096  }
  0x25   :  { %468 = vsyncadd [#allocation6], 4294963200  ;;  %v476_v0 = vmov 0.0   ;;  %vm477_vm0 = vmmov 0   ;;  %v76_v1 = vld [vmem:[#allocation5 + $0x78] sm:$0xff]  ;;  %v75_v2 = vld [vmem:[#allocation5 + $0x70] sm:$0xff] }
  0x26   :  { %305 = vmatprep.subr.mxu0 %v476_v0  ;;  %337 = vmatprep.mubr.msk.f32.mxu0 %vm477_vm0, %v476_v0  ;;  %v74_v3 = vld [vmem:[#allocation5 + $0x68] sm:$0xff]  ;;  %v73_v4 = vld [vmem:[#allocation5 + $0x60] sm:$0xff]  ;;  %v174_v5 = vld [vmem:[#allocation7 + $0x78] sm:$0xff]  ;;  %s478_s11 = smov [#allocation8]  }
  0x27   :  { %340 = vmatprep.subr.mxu1 %v476_v0  ;;  %372 = vmatprep.mubr.msk.f32.mxu1 %vm477_vm0, %v476_v0  ;;  %v72_v6 = vld [vmem:[#allocation5 + $0x58] sm:$0xff]  ;;  %v173_v7 = vld [vmem:[#allocation7 + $0x70] sm:$0xff]  ;;  %v172_v8 = vld [vmem:[#allocation7 + $0x68] sm:$0xff]  ;;  %s259_s12 = sshll.u32 %s478_s11, 4  ;;  %s260_s12 = int_to_ptr.vmem [resolvable:$true] %s259_s12 }
  0x28   :  { %306 = vmatpush3.msra.mxu0 %v76_v1  ;;  %341 = vmatpush3.msra.mxu1 %v174_v5  ;;  %v71_v9 = vld [vmem:[#allocation5 + $0x50] sm:$0xff]  ;;  %v171_v10 = vld [vmem:[#allocation7 + $0x60] sm:$0xff]  ;;  %v70_v11 = vld [vmem:[#allocation5 + $0x48] sm:$0xff]  ;;  %p450_p2 = scmp.lt.s32.totalorder %s260_s12, %s260_s12 }
  0x29   :  { %307 = vmatprep.subr.mxu0 %v476_v0  ;;  %342 = vmatprep.subr.mxu1 %v476_v0  ;;  %v69_v12 = vld [vmem:[#allocation5 + $0x40] sm:$0xff]  ;;  %v68_v13 = vld [vmem:[#allocation5 + $0x38] sm:$0xff]  ;;  %v67_v14 = vld [vmem:[#allocation5 + $0x30] sm:$0xff] }
  0x2a   :  { %308 = vmatpush3.msra.mxu0 %v75_v2  ;;  %343 = vmatpush3.msra.mxu1 %v173_v7  ;;  %v66_v15 = vld [vmem:[#allocation5 + $0x28] sm:$0xff]  ;;  %v65_v16 = vld [vmem:[#allocation5 + $0x20] sm:$0xff]  ;;  %v64_v17 = vld [vmem:[#allocation5 + $0x18] sm:$0xff] }
  0x2b   :  { %309 = vmatprep.subr.mxu0 %v476_v0  ;;  %344 = vmatprep.subr.mxu1 %v476_v0  ;;  %v63_v18 = vld [vmem:[#allocation5 + $0x10] sm:$0xff]  ;;  %v62_v19 = vld [vmem:[#allocation5 + $0x8] sm:$0xff]  ;;  %v61_v20 = vld [vmem:[#allocation5] sm:$0xff] }
  0x2c   :  { %310 = vmatpush3.msra.mxu0 %v74_v3  ;;  %345 = vmatpush3.msra.mxu1 %v172_v8  ;;  %v60_v21 = vld [vmem:[#allocation2] sm:$0xff]  ;;  %v169_v23 = vld [vmem:[#allocation7 + $0x50] sm:$0xff]  ;;  %v168_v24 = vld [vmem:[#allocation7 + $0x48] sm:$0xff] }
  0x2d   :  { %311 = vmatprep.subr.mxu0 %v476_v0  ;;  %346 = vmatprep.subr.mxu1 %v476_v0  ;;  %v170_v22 = vld [vmem:[#allocation7 + $0x58] sm:$0xff]  ;;  %v167_v25 = vld [vmem:[#allocation7 + $0x40] sm:$0xff]  ;;  %v165_v27 = vld [vmem:[#allocation7 + $0x30] sm:$0xff] }
  0x2e   :  { %312 = vmatpush3.msra.mxu0 %v73_v4  ;;  %347 = vmatpush3.msra.mxu1 %v171_v10  ;;  %v166_v26 = vld [vmem:[#allocation7 + $0x38] sm:$0xff]  ;;  %v164_v28 = vld [vmem:[#allocation7 + $0x28] sm:$0xff]  ;;  %v163_v29 = vld [vmem:[#allocation7 + $0x20] sm:$0xff] }
  0x2f   :  { %313 = vmatprep.subr.mxu0 %v476_v0  ;;  %348 = vmatprep.subr.mxu1 %v476_v0  ;;  %v162_v30 = vld [vmem:[#allocation7 + $0x18] sm:$0xff]  ;;  %v161_v31 = vld [vmem:[#allocation7 + $0x10] sm:$0xff]  ;;  %v160_v32 = vld [vmem:[#allocation7 + $0x8] sm:$0xff] }
  0x30   :  { %314 = vmatpush3.msra.mxu0 %v72_v6  ;;  %349 = vmatpush3.msra.mxu1 %v170_v22  ;;  %v159_v33 = vld [vmem:[#allocation7] sm:$0xff]  ;;  %v269_v34 = vld [vmem:[%s563_s2] ss:$0 sm:$0xff]  ;;  %s445_s2 = scalar_lea.vmem %s260_s12, 128 }
  0x31   :  { %315 = vmatprep.subr.mxu0 %v476_v0  ;;  %350 = vmatprep.subr.mxu1 %v476_v0  ;;  %v270_v43 = vld [vmem:[%s565_s4] ss:$0 sm:$0xff]  ;;  %p446_p1 = scmp.ne.s32.totalorder %s260_s12, %s445_s2  ;;  %p451_p3 = scmp.lt.s32.totalorder %s445_s2, %s445_s2 }
  0x32   :  { %316 = vmatpush3.msra.mxu0 %v71_v9  ;;  %351 = vmatpush3.msra.mxu1 %v169_v23 }
  0x33   :  { %317 = vmatprep.subr.mxu0 %v476_v0  ;;  %352 = vmatprep.subr.mxu1 %v476_v0  ;;  %p452_p4 = por %p451_p3, %p450_p2 }
  0x34   :  { %318 = vmatpush3.msra.mxu0 %v70_v11  ;;  %353 = vmatpush3.msra.mxu1 %v168_v24 }
  0x35   :  { %319 = vmatprep.subr.mxu0 %v476_v0  ;;  %354 = vmatprep.subr.mxu1 %v476_v0  ;;  %p453_p5 = pnand %p452_p4, %p446_p1 }
  0x36   :  { %320 = vmatpush3.msra.mxu0 %v69_v12  ;;  %355 = vmatpush3.msra.mxu1 %v167_v25 }
  0x37   :  { %321 = vmatprep.subr.mxu0 %v476_v0  ;;  %356 = vmatprep.subr.mxu1 %v476_v0 }
  0x38   :  { %322 = vmatpush3.msra.mxu0 %v68_v13  ;;  %357 = vmatpush3.msra.mxu1 %v166_v26 }
  0x39   :  { %323 = vmatprep.subr.mxu0 %v476_v0  ;;  %358 = vmatprep.subr.mxu1 %v476_v0 }
  0x3a   :  { %324 = vmatpush3.msra.mxu0 %v67_v14  ;;  %359 = vmatpush3.msra.mxu1 %v165_v27 }
  0x3b   :  { %325 = vmatprep.subr.mxu0 %v476_v0  ;;  %360 = vmatprep.subr.mxu1 %v476_v0 }
  0x3c   :  { %326 = vmatpush3.msra.mxu0 %v66_v15  ;;  %361 = vmatpush3.msra.mxu1 %v164_v28 }
  0x3d   :  { %327 = vmatprep.subr.mxu0 %v476_v0  ;;  %362 = vmatprep.subr.mxu1 %v476_v0 }
  0x3e   :  { %328 = vmatpush3.msra.mxu0 %v65_v16  ;;  %363 = vmatpush3.msra.mxu1 %v163_v29 }
  0x3f   :  { %329 = vmatprep.subr.mxu0 %v476_v0  ;;  %364 = vmatprep.subr.mxu1 %v476_v0 }
  0x40   :  { %330 = vmatpush3.msra.mxu0 %v64_v17  ;;  %365 = vmatpush3.msra.mxu1 %v162_v30 }
  0x41   :  { %331 = vmatprep.subr.mxu0 %v476_v0  ;;  %366 = vmatprep.subr.mxu1 %v476_v0 }
  0x42   :  { %332 = vmatpush3.msra.mxu0 %v63_v18  ;;  %367 = vmatpush3.msra.mxu1 %v161_v31 }
  0x43   :  { %333 = vmatprep.subr.mxu0 %v476_v0  ;;  %368 = vmatprep.subr.mxu1 %v476_v0 }
  0x44   :  { %334 = vmatpush3.msra.mxu0 %v62_v19  ;;  %369 = vmatpush3.msra.mxu1 %v160_v32 }
  0x45   :  { %335 = vmatprep.subr.mxu0 %v476_v0  ;;  %370 = vmatprep.subr.mxu1 %v476_v0 }
  0x46   :  { %336 = vmatpush3.msra.mxu0 %v61_v20  ;;  %371 = vmatpush3.msra.mxu1 %v159_v33 }
  0x47   :  { %338 = vmatmul.mubr.f32.vlgmr.msra.gmra.mxu0 %v60_v21 }
 0x107   :  { %v150_v35 = vpop.f32.mrf.mxu0 }
 0x108   :  { %v151_v36 = vadd.f32 %v269_v34, %v150_v35 }
 0x109   :  { %v339_v37 = vpop.f32.mrf.mxu0 }
 0x10a   :  { %v155_v38 = vmul.f32 0.70710677, %v151_v36  ;;  %v154_v40 = vmul.f32 0.5, %v151_v36 }
 0x10c   :  { %383 = verf.f32 %v155_v38 }
 0x119   :  { %v384_v39 = vpop.eup %383 }
 0x11a   :  { %v157_v41 = vadd.f32 1.0, %v384_v39 }
 0x11c   :  { %v158_v42 = vmul.f32 %v157_v41, %v154_v40 }
 0x11e   :  { %373 = vmatmul.mubr.f32.vlgmr.msra.gmra.mxu1 %v158_v42 }
 0x1de   :  { %v248_v44 = vpop.f32.mrf.mxu1 }
 0x1df   :  { %v249_v45 = vadd.f32 %v270_v43, %v248_v44 }
 0x1e0   :  { %v374_v46 = vpop.f32.mrf.mxu1 }
 0x1e1   :  { %252 = vst [vmem:[#allocation8] sm:$0xff] %v249_v45 }
 0x1e2   :  { %456 = shalt.err (!%p453_p5)
}
 0x1e3   :  { %262 = dma.vmem_to_hbm [thread:$0]  %s260_s12, 128, %s566_s5, [#allocation4]  }
 0x1e4   :  { %469 = dma.done.wait [#allocation4], 128  }
 0x1e5   :  { %470 = vsyncadd [#allocation4], 4294967168 }
 0x1e6   :  { %266 = vsyncpa [#allocation3], 1 }
 0x1e7   :  { %267 = vsyncpa [#allocation6], 1 }
 0x1e8   :  { %268 = vsyncpa [#allocation4], 1 }

</bundles_post_ra>
